<compile_context>
chip_gen: v6e
topology: v6e:2x2x1
jax: 0.10.0
libtpu: 0.0.40
codegen_flags: <defaults>
</compile_context>

<pallas_src>
import jax
import jax.numpy as jnp
from jax.experimental import pallas as pl
from jax.experimental.pallas import tpu as pltpu


def _round_up(n, m):
    return (n + m - 1) // m * m


def _attention_kernel(x_ref, w_ref, b_ref, o_ref):
    # x_ref: (TB, S, Fp), w_ref: (1, 1, Fp), b_ref: (1, S, 1), o_ref: (TB, Fp)
    x = x_ref[...]
    w = w_ref[...]
    b = b_ref[...]

    # Scores: VPU broadcast-multiply + XLU lane reduce (no N=1 MXU matvec).
    eij = jnp.sum(x * w, axis=-1, keepdims=True) + b          # (TB, S, 1)
    eij = jnp.tanh(eij)
    a = jnp.exp(eij)                                          # (TB, S, 1)
    denom = jnp.sum(a, axis=1, keepdims=True)                 # (TB, 1, 1)
    # Exact divide for bit-faithful softmax normalization (the approx EUP
    # reciprocal previously exceeded the correctness tolerance).
    a = a / denom + 1e-10                                     # (TB, S, 1)

    # Weighted sum over steps: VPU multiply + sublane reduce -> lane-dense store.
    o_ref[...] = jnp.sum(x * a, axis=1).astype(o_ref.dtype)   # (TB, Fp)


def attention_forward(x, weight, bias, *, x_vmem_budget_bytes=20 * 1024 * 1024):
    """x: (B, S, F) f32, weight: (F, 1) f32, bias: (S,) f32 -> ((B, F), (F, 1))."""
    B, S, F = x.shape
    Fp = _round_up(F, 128)                    # lane-dense output / unmasked vst
    itemsize = jnp.dtype(x.dtype).itemsize

    # TB rows per grid step, sized so the double-buffered x tile stays within a
    # budget that is safe on v5e/v6e/v7x, rounded to the 8-sublane granule.
    per_row_bytes = S * Fp * itemsize
    tb = max(8, (x_vmem_budget_bytes // (2 * per_row_bytes)) // 8 * 8)
    tb = min(tb, _round_up(B, 8))
    Bp = _round_up(B, tb)

    xp = x
    if (Bp, Fp) != (B, F):
        xp = jnp.pad(x, ((0, Bp - B), (0, 0), (0, Fp - F)))
    wp = weight if Fp == F else jnp.pad(weight, ((0, Fp - F), (0, 0)))
    w3 = wp.reshape(1, 1, Fp)
    b3 = bias.reshape(1, S, 1).astype(x.dtype)

    # TODO(synk): optional `mask` argument of the PyTorch module not implemented
    #             (default mask=None path only).
    # TODO(synk): for very large S*F per row (notably v7x's 64 MiB VMEM), add an
    #             "arbitrary" S-tiling grid axis with a two-pass sum-then-normalize
    #             accumulator (tanh bounds the exponent, so no max-subtraction needed).
    out = pl.pallas_call(
        _attention_kernel,
        out_shape=jax.ShapeDtypeStruct((Bp, Fp), x.dtype),
        grid_spec=pltpu.PrefetchScalarGridSpec(
            num_scalar_prefetch=0,
            grid=(Bp // tb,),
            in_specs=[
                pl.BlockSpec((tb, S, Fp), lambda i: (i, 0, 0)),   # x: TB rows per step
                pl.BlockSpec((1, 1, Fp), lambda i: (0, 0, 0)),    # weight: full, resident
                pl.BlockSpec((1, S, 1), lambda i: (0, 0, 0)),     # bias: full, resident
            ],
            out_specs=pl.BlockSpec((tb, Fp), lambda i: (i, 0)),
        ),
        compiler_params=pltpu.CompilerParams(
            dimension_semantics=("parallel",),
            vmem_limit_bytes=48 * 1024 * 1024,   # above 16/32 MiB defaults, < 64 MiB v7x
        ),
    )(xp, w3, b3)

    out = out[:B, :F]
    # Module returns (weighted sum, weight parameter).
    return out, weight


def _xavier_uniform(key, shape):
    # matches nn.init.xavier_uniform_ for a (fan_in, fan_out) matrix
    fan_in, fan_out = shape[0], shape[1]
    limit = (6.0 / (fan_in + fan_out)) ** 0.5
    return jax.random.uniform(key, shape, jnp.float32, -limit, limit)


def _reference(x, weight, bias):
    B, S, F = x.shape
    eij = (x.reshape(-1, F) @ weight).reshape(B, S) + bias
    eij = jnp.tanh(eij)
    a = jnp.exp(eij)
    a = a / jnp.sum(a, axis=1, keepdims=True) + 1e-10
    return jnp.sum(x * a[..., None], axis=1)


if __name__ == "__main__":
    batch, step_dim, feature_dim = 2, 8, 32

    key = jax.random.PRNGKey(0)
    kx, kw = jax.random.split(key)

    x = jax.random.normal(kx, (batch, step_dim, feature_dim), jnp.float32)
    weight = _xavier_uniform(kw, (feature_dim, 1))       # nn.init.xavier_uniform_
    bias = jnp.zeros((step_dim,), jnp.float32)           # self.b initialized to zeros

    out, w_ret = attention_forward(x, weight, bias)
    out = jax.block_until_ready(out)

    ref = _reference(x, weight, bias)
    assert out.shape == (batch, feature_dim)
    assert w_ret.shape == (feature_dim, 1)
    max_err = float(jnp.max(jnp.abs(out - ref)))
    assert jnp.allclose(out, ref, atol=1e-5, rtol=1e-5), max_err

    print("KERNEL_OK")
</pallas_src>

<mosaic_0001>
module attributes {stable_mosaic.version = 11 : i64} {
  func.func @_attention_kernel(%arg0: i32, %arg1: memref<8x8x128xf32, #tpu.memory_space<vmem>>, %arg2: memref<1x1x128xf32, #tpu.memory_space<vmem>>, %arg3: memref<1x8x1xf32, #tpu.memory_space<vmem>>, %arg4: memref<8x128xf32, #tpu.memory_space<vmem>>) attributes {dimension_semantics = [#tpu.dimension_semantics<parallel>], iteration_bounds = array<i64: 1>, scalar_prefetch = 0 : i64, scratch_operands = 0 : i64, tpu.core_type = #tpu.core_type<tc>, window_params = [{transform_indices = @transform_0, window_bounds = array<i64: 8, 8, 128>}, {pipeline_mode = #tpu.pipeline_mode<synchronous>, transform_indices = @transform_1, window_bounds = array<i64: 1, 1, 128>}, {pipeline_mode = #tpu.pipeline_mode<synchronous>, transform_indices = @transform_2, window_bounds = array<i64: 1, 8, 1>}, {transform_indices = @transform_3, window_bounds = array<i64: 8, 128>}]} {
    %c0 = arith.constant 0 : index
    %c0_0 = arith.constant 0 : index
    %c0_1 = arith.constant 0 : index
    %0 = vector.load %arg1[%c0, %c0_0, %c0_1] : memref<8x8x128xf32, #tpu.memory_space<vmem>>, vector<8x8x128xf32>
    %c0_2 = arith.constant 0 : index
    %c0_3 = arith.constant 0 : index
    %c0_4 = arith.constant 0 : index
    %1 = vector.load %arg2[%c0_2, %c0_3, %c0_4] : memref<1x1x128xf32, #tpu.memory_space<vmem>>, vector<1x1x128xf32>
    %c0_5 = arith.constant 0 : index
    %c0_6 = arith.constant 0 : index
    %c0_7 = arith.constant 0 : index
    %2 = vector.load %arg3[%c0_5, %c0_6, %c0_7] : memref<1x8x1xf32, #tpu.memory_space<vmem>>, vector<1x8x1xf32>
    %3 = vector.broadcast %1 : vector<1x1x128xf32> to vector<8x8x128xf32>
    %4 = arith.mulf %0, %3 : vector<8x8x128xf32>
    %cst = arith.constant dense<0.000000e+00> : vector<8x8xf32>
    %5 = vector.multi_reduction <add>, %4, %cst [2] : vector<8x8x128xf32> to vector<8x8xf32>
    %6 = vector.shape_cast %5 : vector<8x8xf32> to vector<8x8x1xf32>
    %7 = vector.broadcast %2 : vector<1x8x1xf32> to vector<8x8x1xf32>
    %8 = arith.addf %6, %7 : vector<8x8x1xf32>
    %9 = math.tanh %8 : vector<8x8x1xf32>
    %10 = math.exp %9 : vector<8x8x1xf32>
    %cst_8 = arith.constant dense<0.000000e+00> : vector<8x1xf32>
    %11 = vector.multi_reduction <add>, %10, %cst_8 [1] : vector<8x8x1xf32> to vector<8x1xf32>
    %12 = vector.shape_cast %11 : vector<8x1xf32> to vector<8x1x1xf32>
    %13 = vector.broadcast %12 : vector<8x1x1xf32> to vector<8x8x1xf32>
    %14 = arith.divf %10, %13 : vector<8x8x1xf32>
    %cst_9 = arith.constant 1.000000e-10 : f32
    %15 = vector.broadcast %cst_9 : f32 to vector<8x8x1xf32>
    %16 = arith.addf %14, %15 : vector<8x8x1xf32>
    %17 = vector.broadcast %16 : vector<8x8x1xf32> to vector<8x8x128xf32>
    %18 = arith.mulf %0, %17 : vector<8x8x128xf32>
    %cst_10 = arith.constant dense<0.000000e+00> : vector<8x128xf32>
    %19 = vector.multi_reduction <add>, %18, %cst_10 [1] : vector<8x8x128xf32> to vector<8x128xf32>
    %c0_11 = arith.constant 0 : index
    %c0_12 = arith.constant 0 : index
    %20 = vector.load %arg4[%c0_11, %c0_12] : memref<8x128xf32, #tpu.memory_space<vmem>>, vector<8x128xf32>
    tpu.vector_store %arg4[%c0_11, %c0_12], %19 {strides = array<i32>} : memref<8x128xf32, #tpu.memory_space<vmem>>, vector<8x128xf32>,
    return
  }
  func.func @transform_0(%arg0: i32) -> (i32, i32, i32) {
    %c0_i32 = arith.constant 0 : i32
    %c0_i32_0 = arith.constant 0 : i32
    %c0_i32_1 = arith.constant 0 : i32
    return %arg0, %c0_i32, %c0_i32_0 : i32, i32, i32
  }
  func.func @transform_1(%arg0: i32) -> (i32, i32, i32) {
    %c0_i32 = arith.constant 0 : i32
    %c0_i32_0 = arith.constant 0 : i32
    %c0_i32_1 = arith.constant 0 : i32
    %c0_i32_2 = arith.constant 0 : i32
    return %c0_i32, %c0_i32_0, %c0_i32_1 : i32, i32, i32
  }
  func.func @transform_2(%arg0: i32) -> (i32, i32, i32) {
    %c0_i32 = arith.constant 0 : i32
    %c0_i32_0 = arith.constant 0 : i32
    %c0_i32_1 = arith.constant 0 : i32
    %c0_i32_2 = arith.constant 0 : i32
    return %c0_i32, %c0_i32_0, %c0_i32_1 : i32, i32, i32
  }
  func.func @transform_3(%arg0: i32) -> (i32, i32) {
    %c0_i32 = arith.constant 0 : i32
    %c0_i32_0 = arith.constant 0 : i32
    return %arg0, %c0_i32 : i32, i32
  }
}

</mosaic_0001>

<bundles_post_ra>
// kernel: tpu_custom_call.1
= control target key start
LH: loop header
LB: loop body
LE: loop exit
PB: predicated region body
PF: predicated region fallthrough
CT: control target
= control target key end

     0   :  { %8 = vsyncpa [#allocation3], 0  ;;  %s526_s0 = inlined_call_operand.hbm [shape: f32[8,8,128], index: 0, kind: input, shape index: {}]   ;;  %s527_s1 = inlined_call_operand.vmem [shape: f32[1,1,128], index: 1, kind: input, shape index: {}]   ;;  %s528_s2 = inlined_call_operand.vmem [shape: f32[1,8,1], index: 2, kind: input, shape index: {}]   ;;  %s529_s3 = inlined_call_operand.hbm [shape: f32[8,128], index: 3, kind: output, shape index: {}]  }
   0x1   :  { %9 = vsyncpa [#allocation4], 0  ;;  %s417_s12 = smov [#allocation2]  }
   0x2   :  { %s15_s13 = sshll.u32 %s417_s12, 4  ;;  %s16_s13 = int_to_ptr.vmem [resolvable:$true] %s15_s13 }
   0x3   :  { %s381_s14 = scalar_lea.vmem %s16_s13, 1024  ;;  %p386_p1 = scmp.lt.s32.totalorder %s16_s13, %s16_s13 }
   0x4   :  { %p382_p0 = scmp.ne.s32.totalorder %s16_s13, %s381_s14  ;;  %p387_p2 = scmp.lt.s32.totalorder %s381_s14, %s381_s14 }
   0x6   :  { %p388_p3 = por %p387_p2, %p386_p1 }
   0x8   :  { %p389_p4 = pnand %p388_p3, %p382_p0 }
   0xa   :  { %392 = shalt.err (!%p389_p4)
}
   0xb   :  { %s418_s15 = smov 128   ;;  %s419_s16 = smov 8  }
   0xc   :  { %21 = dma.hbm_to_vmem [thread:$0]  %s526_s0, 1024, %s16_s13, [#allocation3], %s418_s15, %s418_s15, %s419_s16  }
   0xd   :  { %413 = dma.done.wait [#allocation3], 1024  }
   0xe   :  { %414 = vsyncadd [#allocation3], 4294966272  ;;  %v445_v0 = vld [vmem:[#allocation2 + $0x10] sm:$0xff]  ;;  %v317_v1 = vld [vmem:[%s527_s1] ss:$0 sm:$0xff]  ;;  %v420_v17 = vmov 0  }
   0xf   :  { %v450_v2 = vld [vmem:[#allocation2] sm:$0xff]  ;;  %v47_v3 = vmul.f32 %v317_v1, %v445_v0  ;;  %v454_v5 = vld [vmem:[#allocation2 + $0x18] sm:$0xff]  ;;  %v456_v6 = vld [vmem:[#allocation2 + $0x8] sm:$0xff]  ;;  %323 = vset.pattern.permute.xlu0 %v420_v17  ;;  %324 = vset.pattern.permute.xlu1 %v420_v17  ;;  %vm101_vm0 = vcmask 7168   ;;  %vm286_vm1 = vcmask 1041409   ;;  %vm288_vm2 = vcmask 1042434  }
  0x10   :  { %v45_v4 = vmul.f32 %v317_v1, %v450_v2  ;;  %v48_v7 = vmul.f32 %v317_v1, %v454_v5  ;;  %v46_v8 = vmul.f32 %v317_v1, %v456_v6  ;;  %v460_v9 = vld [vmem:[#allocation2 + $0x28] sm:$0xff]  ;;  %v462_v10 = vld [vmem:[#allocation2 + $0x20] sm:$0xff]  ;;  %v466_v13 = vld [vmem:[#allocation2 + $0x38] sm:$0xff]  ;;  %vm290_vm3 = vcmask 1043459  }
  0x11   :  { %57 = vadd.xlane.f32.xlu1 %v47_v3  ;;  %v50_v11 = vmul.f32 %v317_v1, %v460_v9  ;;  %v49_v12 = vmul.f32 %v317_v1, %v462_v10  ;;  %v468_v14 = vld [vmem:[#allocation2 + $0x30] sm:$0xff]  ;;  %v52_v15 = vmul.f32 %v317_v1, %v466_v13  ;;  %v38_v18 = vld [vmem:[%s528_s2] sm:$0xff]  ;;  %vm292_vm4 = vcmask 1044484   ;;  %s421_s2 = smov [#allocation5]  }
  0x12   :  { %53 = vadd.xlane.f32.xlu0 %v45_v4  ;;  %v51_v16 = vmul.f32 %v317_v1, %v468_v14  ;;  %vm294_vm5 = vcmask 1045509   ;;  %vm296_vm6 = vcmask 1046534   ;;  %s308_s21 = sshll.u32 %s421_s2, 4  ;;  %vm298_vm7 = vcmask 1047559   ;;  %s309_s21 = int_to_ptr.vmem [resolvable:$true] %s308_s21 }
  0x13   :  { %s393_s22 = scalar_lea.vmem %s309_s21, 128  ;;  %p398_p6 = scmp.lt.s32.totalorder %s309_s21, %s309_s21 }
  0x14   :  { %p394_p5 = scmp.ne.s32.totalorder %s309_s21, %s393_s22  ;;  %p399_p7 = scmp.lt.s32.totalorder %s393_s22, %s393_s22 }
  0x15   :  { %59 = vadd.xlane.f32.xlu1 %v48_v7 }
  0x16   :  { %55 = vadd.xlane.f32.xlu0 %v46_v8  ;;  %p400_p8 = por %p399_p7, %p398_p6 }
  0x18   :  { %p401_p9 = pnand %p400_p8, %p394_p5 }
  0x19   :  { %63 = vadd.xlane.f32.xlu1 %v50_v11 }
  0x1a   :  { %61 = vadd.xlane.f32.xlu0 %v49_v12 }
  0x1d   :  { %67 = vadd.xlane.f32.xlu1 %v52_v15 }
  0x1e   :  { %65 = vadd.xlane.f32.xlu0 %v51_v16 }
  0x9a   :  { %v58_v19 = vpop.xlane.xlu1 %57 }
  0x9b   :  { %v54_v20 = vpop.xlane.xlu0 %53  ;;  %v71_v21 = vadd.f32 %v58_v19, %v38_v18 }
  0x9c   :  { %v69_v22 = vadd.f32 %v54_v20, %v38_v18 }
  0x9d   :  { %325 = vtanh.f32 %v71_v21 }
  0x9e   :  { %327 = vtanh.f32 %v69_v22  ;;  %v60_v23 = vpop.xlane.xlu1 %59 }
  0x9f   :  { %v56_v24 = vpop.xlane.xlu0 %55  ;;  %v72_v25 = vadd.f32 %v60_v23, %v38_v18 }
  0xa0   :  { %v70_v26 = vadd.f32 %v56_v24, %v38_v18 }
  0xa1   :  { %329 = vtanh.f32 %v72_v25 }
  0xa2   :  { %331 = vtanh.f32 %v70_v26  ;;  %v64_v27 = vpop.xlane.xlu1 %63 }
  0xa3   :  { %v62_v28 = vpop.xlane.xlu0 %61  ;;  %v74_v29 = vadd.f32 %v64_v27, %v38_v18 }
  0xa4   :  { %v73_v30 = vadd.f32 %v62_v28, %v38_v18 }
  0xa5   :  { %333 = vtanh.f32 %v74_v29 }
  0xa6   :  { %335 = vtanh.f32 %v73_v30  ;;  %v68_v31 = vpop.xlane.xlu1 %67 }
  0xa7   :  { %v66_v32 = vpop.xlane.xlu0 %65  ;;  %v76_v33 = vadd.f32 %v68_v31, %v38_v18 }
  0xa8   :  { %v75_v34 = vadd.f32 %v66_v32, %v38_v18 }
  0xa9   :  { %337 = vtanh.f32 %v76_v33 }
  0xaa   :  { %v326_v35 = vpop.eup %325  ;;  %339 = vtanh.f32 %v75_v34 }
  0xab   :  { %v328_v36 = vpop.eup %327  ;;  %v89_v37 = vmul.f32 1.442695, %v326_v35 }
  0xac   :  { %v85_v38 = vmul.f32 1.442695, %v328_v36 }
  0xad   :  { %341 = vpow2.f32 %v89_v37 }
  0xae   :  { %v330_v39 = vpop.eup %329  ;;  %343 = vpow2.f32 %v85_v38 }
  0xaf   :  { %v332_v40 = vpop.eup %331  ;;  %v91_v41 = vmul.f32 1.442695, %v330_v39 }
  0xb0   :  { %v87_v42 = vmul.f32 1.442695, %v332_v40 }
  0xb1   :  { %345 = vpow2.f32 %v91_v41 }
  0xb2   :  { %v334_v43 = vpop.eup %333  ;;  %347 = vpow2.f32 %v87_v42 }
  0xb3   :  { %v336_v44 = vpop.eup %335  ;;  %v95_v45 = vmul.f32 1.442695, %v334_v43 }
  0xb4   :  { %v93_v46 = vmul.f32 1.442695, %v336_v44 }
  0xb5   :  { %349 = vpow2.f32 %v95_v45 }
  0xb6   :  { %v338_v47 = vpop.eup %337  ;;  %351 = vpow2.f32 %v93_v46 }
  0xb7   :  { %v340_v48 = vpop.eup %339  ;;  %v99_v49 = vmul.f32 1.442695, %v338_v47 }
  0xb8   :  { %v97_v50 = vmul.f32 1.442695, %v340_v48 }
  0xb9   :  { %353 = vpow2.f32 %v99_v49 }
  0xba   :  { %v475_v51 = vpop.eup %341  ;;  %355 = vpow2.f32 %v97_v50 }
  0xbb   :  { %v477_v52 = vpop.eup %343  ;;  %v116_v53 = vsel %vm101_vm0, %v475_v51, 0.0 }
  0xbc   :  { %v117_v54 = vrot.slane %v116_v53, 4  ;;  %v102_v55 = vsel %vm101_vm0, %v477_v52, 0.0 }
  0xbd   :  { %v103_v56 = vrot.slane %v102_v55, 4 }
  0xbe   :  { %v483_v57 = vpop.eup %345  ;;  %v118_v58 = vadd.f32 %v117_v54, %v116_v53 }
  0xbf   :  { %v485_v59 = vpop.eup %347  ;;  %v104_v60 = vadd.f32 %v103_v56, %v102_v55  ;;  %v123_v61 = vsel %vm101_vm0, %v483_v57, 0.0 }
  0xc0   :  { %v119_v62 = vrot.slane %v118_v58, 2  ;;  %v124_v63 = vrot.slane %v123_v61, 4  ;;  %v109_v1 = vsel %vm101_vm0, %v485_v59, 0.0 }
  0xc1   :  { %v105_v3 = vrot.slane %v104_v60, 2  ;;  %v110_v4 = vrot.slane %v109_v1, 4 }
  0xc2   :  { %v491_v7 = vpop.eup %349  ;;  %v125_v8 = vadd.f32 %v124_v63, %v123_v61  ;;  %v120_v11 = vadd.f32 %v119_v62, %v118_v58 }
  0xc3   :  { %v493_v12 = vpop.eup %351  ;;  %v111_v15 = vadd.f32 %v110_v4, %v109_v1  ;;  %v137_v16 = vsel %vm101_vm0, %v491_v7, 0.0  ;;  %v106_v17 = vadd.f32 %v105_v3, %v104_v60 }
  0xc4   :  { %v126_v18 = vrot.slane %v125_v8, 2  ;;  %v138_v19 = vrot.slane %v137_v16, 4  ;;  %v130_v20 = vsel %vm101_vm0, %v493_v12, 0.0  ;;  %v121_v21 = vrot.slane %v120_v11, 1 }
  0xc5   :  { %v112_v22 = vrot.slane %v111_v15, 2  ;;  %v131_v23 = vrot.slane %v130_v20, 4  ;;  %v107_v24 = vrot.slane %v106_v17, 1 }
  0xc6   :  { %v499_v25 = vpop.eup %353  ;;  %v139_v26 = vadd.f32 %v138_v19, %v137_v16  ;;  %v127_v27 = vadd.f32 %v126_v18, %v125_v8  ;;  %v122_v36 = vadd.f32 %v121_v21, %v120_v11 }
  0xc7   :  { %v501_v28 = vpop.eup %355  ;;  %v132_v29 = vadd.f32 %v131_v23, %v130_v20  ;;  %v151_v30 = vsel %vm101_vm0, %v499_v25, 0.0  ;;  %v108_v31 = vadd.f32 %v107_v24, %v106_v17  ;;  %v113_v32 = vadd.f32 %v112_v22, %v111_v15 }
  0xc8   :  { %v140_v33 = vrot.slane %v139_v26, 2  ;;  %v152_v34 = vrot.slane %v151_v30, 4  ;;  %v144_v35 = vsel %vm101_vm0, %v501_v28, 0.0  ;;  %v128_v40 = vrot.slane %v127_v27, 1 }
  0xc9   :  { %v133_v37 = vrot.slane %v132_v29, 2  ;;  %v145_v38 = vrot.slane %v144_v35, 4  ;;  %357 = vrcp.f32 %v108_v31  ;;  %v114_v39 = vrot.slane %v113_v32, 1 }
  0xca   :  { %v153_v44 = vadd.f32 %v152_v34, %v151_v30  ;;  %359 = vrcp.f32 %v122_v36  ;;  %v141_v45 = vadd.f32 %v140_v33, %v139_v26  ;;  %v129_v47 = vadd.f32 %v128_v40, %v127_v27 }
  0xcb   :  { %v146_v41 = vadd.f32 %v145_v38, %v144_v35  ;;  %v115_v42 = vadd.f32 %v114_v39, %v113_v32  ;;  %v134_v43 = vadd.f32 %v133_v37, %v132_v29 }
  0xcc   :  { %v154_v49 = vrot.slane %v153_v44, 2  ;;  %v142_v53 = vrot.slane %v141_v45, 1 }
  0xcd   :  { %v147_v46 = vrot.slane %v146_v41, 2  ;;  %361 = vrcp.f32 %v115_v42  ;;  %v135_v48 = vrot.slane %v134_v43, 1 }
  0xce   :  { %363 = vrcp.f32 %v129_v47  ;;  %v143_v55 = vadd.f32 %v142_v53, %v141_v45  ;;  %v155_v58 = vadd.f32 %v154_v49, %v153_v44 }
  0xcf   :  { %v136_v50 = vadd.f32 %v135_v48, %v134_v43  ;;  %v148_v54 = vadd.f32 %v147_v46, %v146_v41 }
  0xd0   :  { %v156_v3 = vrot.slane %v155_v58, 1 }
  0xd1   :  { %365 = vrcp.f32 %v136_v50  ;;  %v149_v56 = vrot.slane %v148_v54, 1 }
  0xd2   :  { %367 = vrcp.f32 %v143_v55  ;;  %v157_v16 = vadd.f32 %v156_v3, %v155_v58 }
  0xd3   :  { %v150_v1 = vadd.f32 %v149_v56, %v148_v54 }
  0xd5   :  { %369 = vrcp.f32 %v150_v1 }
  0xd6   :  { %v358_v60 = vpop.eup %357  ;;  %371 = vrcp.f32 %v157_v16 }
  0xd7   :  { %v159_v61 = vmul.f32 %v358_v60, %v477_v52  ;;  %v360_v62 = vpop.eup %359 }
  0xd8   :  { %v163_v15 = vmul.f32 %v360_v62, %v475_v51 }
  0xd9   :  { %v174_v63 = vadd.f32 1e-10, %v159_v61 }
  0xda   :  { %v362_v4 = vpop.eup %361  ;;  %v176_v18 = vadd.f32 1e-10, %v163_v15 }
  0xdb   :  { %184 = vperm.xlu0 %323, %v174_v63   ;;  %v161_v8 = vmul.f32 %v362_v4, %v485_v59  ;;  %v364_v17 = vpop.eup %363 }
  0xdc   :  { %v165_v19 = vmul.f32 %v364_v17, %v483_v57 }
  0xdd   :  { %v175_v11 = vadd.f32 1e-10, %v161_v8 }
  0xde   :  { %v366_v52 = vpop.eup %365  ;;  %v177_v20 = vadd.f32 1e-10, %v165_v19 }
  0xdf   :  { %189 = vperm.xlu1 %324, %v175_v11   ;;  %v167_v21 = vmul.f32 %v366_v52, %v493_v12  ;;  %v368_v22 = vpop.eup %367 }
  0xe0   :  { %v169_v59 = vmul.f32 %v368_v22, %v491_v7 }
  0xe1   :  { %v178_v23 = vadd.f32 1e-10, %v167_v21 }
  0xe2   :  { %v370_v24 = vpop.eup %369  ;;  %v179_v51 = vadd.f32 1e-10, %v169_v59 }
  0xe3   :  { %194 = vperm.xlu1 %324, %v176_v18   ;;  %v171_v26 = vmul.f32 %v370_v24, %v501_v28  ;;  %v372_v27 = vpop.eup %371 }
  0xe4   :  { %v173_v57 = vmul.f32 %v372_v27, %v499_v25 }
  0xe5   :  { %v180_v29 = vadd.f32 1e-10, %v171_v26 }
  0xe6   :  { %v181_v30 = vadd.f32 1e-10, %v173_v57 }
  0xe7   :  { %199 = vperm.xlu1 %324, %v177_v20  }
  0xeb   :  { %204 = vperm.xlu1 %324, %v178_v23  }
  0xef   :  { %209 = vperm.xlu1 %324, %v179_v51  }
  0xf3   :  { %214 = vperm.xlu1 %324, %v180_v29  }
  0xf7   :  { %219 = vperm.xlu1 %324, %v181_v30  }
 0x156   :  { %v185_v12 = vpop.permute.xlu0 %184 }
 0x157   :  { %v222_v34 = vmul.f32 %v185_v12, %v450_v2 }
 0x159   :  { %v230_v38 = vrot.slane %v222_v34, 4 }
 0x15a   :  { %v190_v31 = vpop.permute.xlu1 %189 }
 0x15b   :  { %v223_v33 = vmul.f32 %v190_v31, %v456_v6  ;;  %v231_v43 = vadd.f32 %v230_v38, %v222_v34 }
 0x15d   :  { %v236_v36 = vrot.slane %v223_v33, 4  ;;  %v232_v48 = vrot.slane %v231_v43, 2 }
 0x15e   :  { %v195_v32 = vpop.permute.xlu1 %194 }
 0x15f   :  { %v224_v7 = vmul.f32 %v195_v32, %v445_v0  ;;  %v237_v40 = vadd.f32 %v236_v36, %v223_v33  ;;  %v233_v58 = vadd.f32 %v232_v48, %v231_v43 }
 0x161   :  { %v242_v37 = vrot.slane %v224_v7, 4  ;;  %v238_v46 = vrot.slane %v237_v40, 2  ;;  %v234_v15 = vrot.slane %v233_v58, 1 }
 0x162   :  { %v200_v35 = vpop.permute.xlu1 %199 }
 0x163   :  { %v225_v28 = vmul.f32 %v200_v35, %v454_v5  ;;  %v243_v42 = vadd.f32 %v242_v37, %v224_v7  ;;  %v239_v54 = vadd.f32 %v238_v46, %v237_v40  ;;  %v235_v23 = vadd.f32 %v234_v15, %v233_v58 }
 0x165   :  { %v248_v39 = vrot.slane %v225_v28, 4  ;;  %v244_v47 = vrot.slane %v243_v42, 2  ;;  %v240_v3 = vrot.slane %v239_v54, 1 }
 0x166   :  { %v205_v25 = vpop.permute.xlu1 %204 }
 0x167   :  { %v226_v41 = vmul.f32 %v205_v25, %v462_v10  ;;  %v249_v44 = vadd.f32 %v248_v39, %v225_v28  ;;  %v245_v10 = vadd.f32 %v244_v47, %v243_v42  ;;  %v241_v52 = vadd.f32 %v240_v3, %v239_v54 }
 0x169   :  { %v254_v45 = vrot.slane %v226_v41, 4  ;;  %v250_v49 = vrot.slane %v249_v44, 2  ;;  %v246_v11 = vrot.slane %v245_v10, 1 }
 0x16a   :  { %v210_v6 = vpop.permute.xlu1 %209 }
 0x16b   :  { %v255_v0 = vadd.f32 %v254_v45, %v226_v41  ;;  %v227_v2 = vmul.f32 %v210_v6, %v460_v9  ;;  %v251_v60 = vadd.f32 %v250_v49, %v249_v44  ;;  %v247_v22 = vadd.f32 %v246_v11, %v245_v10 }
 0x16d   :  { %v260_v5 = vrot.slane %v227_v2, 4  ;;  %v256_v50 = vrot.slane %v255_v0, 2  ;;  %v252_v16 = vrot.slane %v251_v60, 1 }
 0x16e   :  { %v215_v53 = vpop.permute.xlu1 %214 }
 0x16f   :  { %v261_v55 = vadd.f32 %v260_v5, %v227_v2  ;;  %v228_v56 = vmul.f32 %v215_v53, %v468_v14  ;;  %v257_v63 = vadd.f32 %v256_v50, %v255_v0  ;;  %v253_v59 = vadd.f32 %v252_v16, %v251_v60 }
 0x171   :  { %v262_v61 = vrot.slane %v261_v55, 2  ;;  %v266_v62 = vrot.slane %v228_v56, 4  ;;  %v258_v19 = vrot.slane %v257_v63, 1 }
 0x172   :  { %v220_v1 = vpop.permute.xlu1 %219 }
 0x173   :  { %v263_v4 = vadd.f32 %v262_v61, %v261_v55  ;;  %v267_v9 = vadd.f32 %v266_v62, %v228_v56  ;;  %v229_v8 = vmul.f32 %v220_v1, %v466_v13  ;;  %v259_v26 = vadd.f32 %v258_v19, %v257_v63 }
 0x174   :  { %v287_v13 = vsel %vm286_vm1, %v241_v52, %v235_v23 }
 0x175   :  { %v268_v17 = vrot.slane %v267_v9, 2  ;;  %v272_v18 = vrot.slane %v229_v8, 4  ;;  %v264_v14 = vrot.slane %v263_v4, 1  ;;  %v289_v57 = vsel %vm288_vm2, %v247_v22, %v287_v13 }
 0x176   :  { %v291_v31 = vsel %vm290_vm3, %v253_v59, %v289_v57 }
 0x177   :  { %v269_v20 = vadd.f32 %v268_v17, %v267_v9  ;;  %v273_v21 = vadd.f32 %v272_v18, %v229_v8  ;;  %v265_v27 = vadd.f32 %v264_v14, %v263_v4  ;;  %v293_v32 = vsel %vm292_vm4, %v259_v26, %v291_v31 }
 0x179   :  { %v270_v24 = vrot.slane %v269_v20, 1  ;;  %v274_v51 = vrot.slane %v273_v21, 2  ;;  %v295_v7 = vsel %vm294_vm5, %v265_v27, %v293_v32 }
 0x17b   :  { %v275_v29 = vadd.f32 %v274_v51, %v273_v21  ;;  %v271_v30 = vadd.f32 %v270_v24, %v269_v20 }
 0x17d   :  { %v276_v12 = vrot.slane %v275_v29, 1  ;;  %v297_v34 = vsel %vm296_vm6, %v271_v30, %v295_v7 }
 0x17f   :  { %v277_v33 = vadd.f32 %v276_v12, %v275_v29 }
 0x181   :  { %v299_v35 = vsel %vm298_vm7, %v277_v33, %v297_v34 }
 0x182   :  { %301 = vst [vmem:[#allocation5] sm:$0xff] %v299_v35 }
 0x183   :  { %404 = shalt.err (!%p401_p9)
}
 0x184   :  { %311 = dma.vmem_to_hbm [thread:$0]  %s309_s21, 128, %s529_s3, [#allocation4]  }
 0x185   :  { %415 = dma.done.wait [#allocation4], 128  }
 0x186   :  { %416 = vsyncadd [#allocation4], 4294967168 }
 0x187   :  { %315 = vsyncpa [#allocation3], 1 }
 0x188   :  { %316 = vsyncpa [#allocation4], 1 }

</bundles_post_ra>
